<compile_context>
chip_gen: v7x
topology: tpu7x:2x2x1
jax: 0.10.0
libtpu: 0.0.40
codegen_flags: <defaults>
</compile_context>

<pallas_src>
import functools
import math

import jax
import jax.numpy as jnp
from jax import lax
from jax.experimental import pallas as pl
from jax.experimental.pallas import tpu as pltpu


def _round_up(x, m):
    return ((x + m - 1) // m) * m


def _vec_log_kernel(u_ref, s_ref, sel_ref, out_ref, flat_ref, *, eps, n, sub):
    # u_ref:   (bt, N, N)   eigenvectors
    # s_ref:   (bt, N)      eigenvalues
    # sel_ref: (N*N, VP)    one-hot upper-tri selection, zero-padded to VP lanes
    # out_ref: (bt, VP)     padded output (wrapper slices back to V)
    # flat_ref:(bt, N*N)    VMEM scratch holding lane-dense log-matrix rows
    bt = u_ref.shape[0]

    def body(c, carry):
        off = pl.multiple_of(c * sub, sub)
        u = u_ref[pl.ds(off, sub), :, :].astype(jnp.float32)      # (sub, N, N)
        s = s_ref[pl.ds(off, sub), :].astype(jnp.float32)         # (sub, N)
        if eps is not None:
            s = jnp.maximum(s, eps)
        log_s = jnp.log(s)
        # log(M) = U @ diag(log s) @ U^T : scale columns of U, batched matmul.
        scaled = u * log_s[:, None, :]
        logm = jnp.einsum("bij,bkj->bik", scaled, u,
                          preferred_element_type=jnp.float32)     # (sub, N, N)
        # Lane-dense flat rows for the big selection matmul.
        flat_ref[pl.ds(off, sub), :] = logm.reshape(sub, n * n)
        return carry

    lax.fori_loop(0, bt // sub, body, 0)

    # Upper-triangular extraction as one well-shaped MXU matmul:
    # (bt, N*N) @ (N*N, VP), with VP a multiple of 128 -> unmasked stores.
    out_ref[...] = jnp.dot(flat_ref[...], sel_ref[...],
                           preferred_element_type=jnp.float32
                           ).astype(out_ref.dtype)


def matrix_vectorization(spd, *, svd_singular_value_minimum=None, block_b=512):
    *lead, n, n2 = spd.shape
    assert n == n2, "expected square matrices in the last two dims"
    v = n * (n + 1) // 2
    vp = _round_up(v, 128)           # lane-dense padded output width (136 -> 256)

    b = math.prod(lead) if lead else 1
    x = spd.reshape(b, n, n).astype(jnp.float32)

    # TODO(synk): the eigendecomposition inside matrix_log has no clean Pallas
    # equivalent; it stays in plain XLA (and dominates end-to-end runtime).
    s, u = jnp.linalg.eigh(x)

    # Zero-padded one-hot selection matrix mapping flattened (row-major) matrix
    # entries to the upper-triangular vector (same ordering as torch's boolean
    # triu mask). Exact in f32.
    rows, cols = jnp.triu_indices(n)
    sel = jnp.zeros((n * n, vp), jnp.float32)
    sel = sel.at[rows * n + cols, jnp.arange(v)].set(1.0)

    sub = 16                                   # in-kernel reconstruction chunk
    bt = min(_round_up(block_b, sub), _round_up(b, sub))
    pad = (-b) % bt
    if pad:
        u = jnp.pad(u, ((0, pad), (0, 0), (0, 0)))
        s = jnp.pad(s, ((0, pad), (0, 0)), constant_values=1.0)   # log(1)=0, safe
    bp = b + pad

    cost = pl.CostEstimate(
        flops=int(2 * bp * (n ** 3 + n * n * vp)),
        transcendentals=int(bp * n),
        bytes_accessed=int(4 * (bp * (n * n + n + vp) + n * n * vp)),
    )

    kernel = functools.partial(_vec_log_kernel,
                               eps=svd_singular_value_minimum, n=n, sub=sub)
    out = pl.pallas_call(
        kernel,
        out_shape=jax.ShapeDtypeStruct((bp, vp), jnp.float32),
        grid_spec=pltpu.PrefetchScalarGridSpec(
            num_scalar_prefetch=0,
            grid=(bp // bt,),
            in_specs=[
                pl.BlockSpec((bt, n, n), lambda i: (i, 0, 0)),
                pl.BlockSpec((bt, n), lambda i: (i, 0)),
                pl.BlockSpec((n * n, vp), lambda i: (0, 0)),
            ],
            out_specs=pl.BlockSpec((bt, vp), lambda i: (i, 0)),
            scratch_shapes=[pltpu.VMEM((bt, n * n), jnp.float32)],
        ),
        compiler_params=pltpu.CompilerParams(
            dimension_semantics=("parallel",)),
        cost_estimate=cost,
    )(u, s, sel)

    return out[:b, :v].reshape(*lead, v)


if __name__ == "__main__":
    key = jax.random.PRNGKey(0)
    n = 16
    lead = (2, 4)
    eps = 1e-4

    # Deterministic SPD matrices: A A^T + n*I.
    a = jax.random.normal(key, (*lead, n, n), dtype=jnp.float32)
    spd = jnp.einsum("...ij,...kj->...ik", a, a) + n * jnp.eye(n, dtype=jnp.float32)

    out = matrix_vectorization(spd, svd_singular_value_minimum=eps)
    out = jax.block_until_ready(out)

    # Plain-JAX reference of the forward semantics.
    s_ref, u_ref = jnp.linalg.eigh(spd.reshape(-1, n, n))
    logm_ref = jnp.einsum("bij,bj,bkj->bik", u_ref,
                          jnp.log(jnp.maximum(s_ref, eps)), u_ref)
    r, c = jnp.triu_indices(n)
    ref = logm_ref[:, r, c].reshape(*lead, n * (n + 1) // 2)

    assert out.shape == (*lead, n * (n + 1) // 2), out.shape
    assert jnp.allclose(out, ref, atol=1e-4, rtol=1e-4)
    print("KERNEL_OK")
</pallas_src>

<mosaic_0001>
module attributes {stable_mosaic.version = 11 : i64} {
  func.func @_vec_log_kernel(%arg0: i32, %arg1: memref<16x16x16xf32, #tpu.memory_space<vmem>>, %arg2: memref<16x16xf32, #tpu.memory_space<vmem>>, %arg3: memref<256x256xf32, #tpu.memory_space<vmem>>, %arg4: memref<16x256xf32, #tpu.memory_space<vmem>>, %arg5: memref<16x256xf32, #tpu.memory_space<vmem>>) attributes {dimension_semantics = [#tpu.dimension_semantics<parallel>], iteration_bounds = array<i64: 1>, scalar_prefetch = 0 : i64, scratch_operands = 1 : i64, tpu.core_type = #tpu.core_type<tc>, window_params = [{transform_indices = @transform_0, window_bounds = array<i64: 16, 16, 16>}, {transform_indices = @transform_1, window_bounds = array<i64: 16, 16>}, {pipeline_mode = #tpu.pipeline_mode<synchronous>, transform_indices = @transform_2, window_bounds = array<i64: 256, 256>}, {transform_indices = @transform_3, window_bounds = array<i64: 16, 256>}]} {
    %c0_i32 = arith.constant 0 : i32
    %c16_i32 = arith.constant 16 : i32
    %0 = arith.muli %c0_i32, %c16_i32 : i32
    %1 = tpu.assume_multiple %0, 16 : i32
    %2 = arith.index_cast %1 : i32 to index
    %c0 = arith.constant 0 : index
    %c0_0 = arith.constant 0 : index
    %3 = vector.load %arg1[%2, %c0, %c0_0] : memref<16x16x16xf32, #tpu.memory_space<vmem>>, vector<16x16x16xf32>
    %4 = arith.index_cast %1 : i32 to index
    %c0_1 = arith.constant 0 : index
    %5 = vector.load %arg2[%4, %c0_1] : memref<16x16xf32, #tpu.memory_space<vmem>>, vector<16x16xf32>
    %cst = arith.constant 9.99999974E-5 : f32
    %6 = vector.broadcast %cst : f32 to vector<16x16xf32>
    %7 = arith.maximumf %5, %6 : vector<16x16xf32>
    %8 = math.log %7 : vector<16x16xf32>
    %9 = vector.shape_cast %8 : vector<16x16xf32> to vector<16x1x16xf32>
    %10 = vector.broadcast %9 : vector<16x1x16xf32> to vector<16x16x16xf32>
    %11 = arith.mulf %3, %10 : vector<16x16x16xf32>
    "tpu.trace_start"() <{level = 10 : i32, message = "bij,bkj->bik"}> : () -> ()
    %cst_2 = arith.constant dense<0.000000e+00> : vector<16x16x16xf32>
    %12 = tpu.matmul %11, %3, %cst_2 {dimension_numbers = #tpu.dot_dimension_numbers<[2], [2], [1], [1], [0, 0, 0, 1, 1, 1], [0], [0]>} : vector<16x16x16xf32>, vector<16x16x16xf32>, vector<16x16x16xf32> -> vector<16x16x16xf32>
    "tpu.trace_stop"() : () -> ()
    %13 = vector.shape_cast %12 : vector<16x16x16xf32> to vector<16x256xf32>
    %14 = arith.index_cast %1 : i32 to index
    %c0_3 = arith.constant 0 : index
    %15 = vector.load %arg5[%14, %c0_3] : memref<16x256xf32, #tpu.memory_space<vmem>>, vector<16x256xf32>
    tpu.vector_store %arg5[%14, %c0_3], %13 {strides = array<i32>} : memref<16x256xf32, #tpu.memory_space<vmem>>, vector<16x256xf32>,
    %c1_i32 = arith.constant 1 : i32
    %c0_4 = arith.constant 0 : index
    %c0_5 = arith.constant 0 : index
    %16 = vector.load %arg5[%c0_4, %c0_5] : memref<16x256xf32, #tpu.memory_space<vmem>>, vector<16x256xf32>
    %c0_6 = arith.constant 0 : index
    %c0_7 = arith.constant 0 : index
    %17 = vector.load %arg3[%c0_6, %c0_7] : memref<256x256xf32, #tpu.memory_space<vmem>>, vector<256x256xf32>
    %cst_8 = arith.constant dense<0.000000e+00> : vector<16x256xf32>
    %18 = tpu.matmul %16, %17, %cst_8 {dimension_numbers = #tpu.dot_dimension_numbers<[1], [0], [0], [1], [0, 0, 1, 1], [], []>} : vector<16x256xf32>, vector<256x256xf32>, vector<16x256xf32> -> vector<16x256xf32>
    %c0_9 = arith.constant 0 : index
    %c0_10 = arith.constant 0 : index
    %19 = vector.load %arg4[%c0_9, %c0_10] : memref<16x256xf32, #tpu.memory_space<vmem>>, vector<16x256xf32>
    tpu.vector_store %arg4[%c0_9, %c0_10], %18 {strides = array<i32>} : memref<16x256xf32, #tpu.memory_space<vmem>>, vector<16x256xf32>,
    return
  }
  func.func @transform_0(%arg0: i32) -> (i32, i32, i32) {
    %c0_i32 = arith.constant 0 : i32
    %c0_i32_0 = arith.constant 0 : i32
    %c0_i32_1 = arith.constant 0 : i32
    return %arg0, %c0_i32, %c0_i32_0 : i32, i32, i32
  }
  func.func @transform_1(%arg0: i32) -> (i32, i32) {
    %c0_i32 = arith.constant 0 : i32
    %c0_i32_0 = arith.constant 0 : i32
    return %arg0, %c0_i32 : i32, i32
  }
  func.func @transform_2(%arg0: i32) -> (i32, i32) {
    %c0_i32 = arith.constant 0 : i32
    %c0_i32_0 = arith.constant 0 : i32
    %c0_i32_1 = arith.constant 0 : i32
    return %c0_i32, %c0_i32_0 : i32, i32
  }
  func.func @transform_3(%arg0: i32) -> (i32, i32) {
    %c0_i32 = arith.constant 0 : i32
    %c0_i32_0 = arith.constant 0 : i32
    return %arg0, %c0_i32 : i32, i32
  }
}

</mosaic_0001>

<bundles_post_ra>
// kernel: tpu_custom_call.1
= control target key start
LH: loop header
LB: loop body
LE: loop exit
PB: predicated region body
PF: predicated region fallthrough
CT: control target
= control target key end

     0   :  { %8 = vsyncpa [#allocation4], 0  ;;  %s3657_s0 = inlined_call_operand.hbm [shape: f32[16,16,16], index: 0, kind: input, shape index: {}]   ;;  %s3658_s1 = inlined_call_operand.hbm [shape: f32[16,16], index: 1, kind: input, shape index: {}]   ;;  %s3659_s2 = inlined_call_operand.hbm [shape: f32[256,256], index: 2, kind: input, shape index: {}]   ;;  %s3660_s3 = inlined_call_operand.hbm [shape: f32[16,256], index: 3, kind: output, shape index: {}]  }
   0x1   :  { %9 = vsyncpa [#allocation7], 0 }
   0x2   :  { %10 = vsyncpa [#allocation5], 0  ;;  %s3152_s12 = smov [#allocation6]   ;;  %s3153_s14 = smov [#allocation3]  }
   0x3   :  { %s28_s13 = sshll.u32 %s3152_s12, 4  ;;  %s16_s15 = sshll.u32 %s3153_s14, 4  ;;  %s29_s13 = int_to_ptr.vmem [resolvable:$true] %s28_s13  ;;  %s3189_s15 = int_to_ptr.vmem [resolvable:$true] %s16_s15 }
   0x4   :  { %s3058_s18 = scalar_lea.hbm %s3658_s1, 256 }
   0x5   :  { %p3059_p0 = scmp.ne.s32.totalorder %s3658_s1, %s3058_s18  ;;  %p3062_p1 = scmp.lt.u32.totalorder %s3058_s18, %s3658_s1 }
   0x7   :  { %p3064_p2 = pnand %p3062_p1, %p3059_p0 }
   0x9   :  { %3067 = shalt.err (!%p3064_p2)
}
   0xa   :  { %s3068_s23 = scalar_lea.vmem %s29_s13, 256  ;;  %p3073_p4 = scmp.lt.s32.totalorder %s29_s13, %s29_s13 }
   0xb   :  { %p3069_p3 = scmp.ne.s32.totalorder %s29_s13, %s3068_s23  ;;  %p3074_p5 = scmp.lt.s32.totalorder %s3068_s23, %s3068_s23 }
   0xd   :  { %p3075_p6 = por %p3074_p5, %p3073_p4 }
   0xf   :  { %p3076_p7 = pnand %p3075_p6, %p3069_p3 }
  0x11   :  { %3079 = shalt.err (!%p3076_p7)
}
  0x12   :  { %s3154_s24 = smov 128   ;;  %s3155_s25 = smov 8  }
  0x13   :  { %34 = dma.hbm_to_vmem [thread:$0]  %s3658_s1, 256, %s29_s13, [#allocation7], %s3154_s24, %s3154_s24, %s3155_s25  }
  0x14   :  { %s3080_s30 = scalar_lea.hbm %s3657_s0, 4096 }
  0x15   :  { %p3081_p8 = scmp.ne.s32.totalorder %s3657_s0, %s3080_s30  ;;  %p3084_p9 = scmp.lt.u32.totalorder %s3080_s30, %s3657_s0 }
  0x17   :  { %p3086_p10 = pnand %p3084_p9, %p3081_p8 }
  0x19   :  { %3089 = shalt.err (!%p3086_p10)
}
  0x1a   :  { %s3090_s8 = scalar_lea.vmem %s3189_s15, 4096  ;;  %p3095_p12 = scmp.lt.s32.totalorder %s3189_s15, %s3189_s15 }
  0x1b   :  { %p3091_p11 = scmp.ne.s32.totalorder %s3189_s15, %s3090_s8  ;;  %p3096_p13 = scmp.lt.s32.totalorder %s3090_s8, %s3090_s8 }
  0x1d   :  { %p3097_p0 = por %p3096_p13, %p3095_p12 }
  0x1f   :  { %p3098_p1 = pnand %p3097_p0, %p3091_p11 }
  0x21   :  { %3101 = shalt.err (!%p3098_p1)
}
  0x22   :  { %22 = dma.hbm_to_vmem [thread:$0]  %s3657_s0, 4096, %s3189_s15, [#allocation4], %s3154_s24, %s3154_s24, %s3155_s25  }
  0x23   :  { %s3156_s10 = smov [#allocation8]   ;;  %s3102_s14 = scalar_lea.hbm %s3659_s2, 8192 }
  0x24   :  { %s40_s11 = sshll.u32 %s3156_s10, 4  ;;  %p3103_p2 = scmp.ne.s32.totalorder %s3659_s2, %s3102_s14  ;;  %s41_s11 = int_to_ptr.vmem [resolvable:$true] %s40_s11 }
  0x25   :  { %p3106_p3 = scmp.lt.u32.totalorder %s3102_s14, %s3659_s2 }
  0x27   :  { %p3108_p4 = pnand %p3106_p3, %p3103_p2 }
  0x29   :  { %3111 = shalt.err (!%p3108_p4)
}
  0x2a   :  { %s3112_s20 = scalar_lea.vmem %s41_s11, 8192  ;;  %p3117_p6 = scmp.lt.s32.totalorder %s41_s11, %s41_s11 }
  0x2b   :  { %p3113_p5 = scmp.ne.s32.totalorder %s41_s11, %s3112_s20  ;;  %p3118_p7 = scmp.lt.s32.totalorder %s3112_s20, %s3112_s20 }
  0x2d   :  { %p3119_p8 = por %p3118_p7, %p3117_p6 }
  0x2f   :  { %p3120_p9 = pnand %p3119_p8, %p3113_p5 }
  0x31   :  { %3123 = shalt.err (!%p3120_p9)
}
  0x32   :  { %s3157_s0 = smov 256   ;;  %s3158_s15 = smov 16  }
  0x33   :  { %46 = dma.hbm_to_vmem [thread:$0]  %s3659_s2, 8192, %s41_s11, [#allocation7], %s3157_s0, %s3157_s0, %s3158_s15  }
  0x34   :  { %3146 = dma.done.wait [#allocation4], 4096  }
  0x35   :  { %3147 = vsyncadd [#allocation4], 4294963200 }
  0x36   :  { %3148 = dma.done.wait [#allocation7], 8448  }
  0x37   :  { %3149 = vsyncadd [#allocation7], 4294958848  ;;  %vm310_vm0 = vcmask 130048   ;;  %v58_v1 = vld [vmem:[#allocation3] sm:$0xff]  ;;  %v59_v2 = vld [vmem:[#allocation3 + $0x8] sm:$0xff]  ;;  %v104_v11 = vlaneseq  ;;  %s3162_s2 = smov 48  }
  0x38   :  { %vm3237_vm1 = vmpackc.low %vm310_vm0, %vm310_vm0  ;;  %v90_v3 = vld [vmem:[#allocation6] sm:$0xff]  ;;  %v2807_v5 = vpack.c.bf16 %v59_v2, %v58_v1  ;;  %v60_v6 = vld [vmem:[#allocation3 + $0x10] sm:$0xff]  ;;  %v3159_v9 = vmov 1966171168   ;;  %s3163_s23 = smov 64   ;;  %s3164_s24 = smov 32  }
  0x39   :  { %v92_v4 = vmax.f32 %v90_v3, 0.0001  ;;  %v61_v7 = vld [vmem:[#allocation3 + $0x18] sm:$0xff]  ;;  %v102_v10 = vunpack.c.l.s4 %v3159_v9  ;;  %v74_v12 = vld [vmem:[#allocation3 + $0x80] sm:$0xff]  ;;  %v75_v13 = vld [vmem:[#allocation3 + $0x88] sm:$0xff]  ;;  %v3251_v20 = vshrl.u32 %v104_v11, 7 }
  0x3a   :  { %v2813_v8 = vpack.c.bf16 %v61_v7, %v60_v6  ;;  %2809 = vmatprep.subr.msk.bf16.mxu1 %vm3237_vm1, %v2807_v5  ;;  %v91_v14 = vld [vmem:[#allocation6 + $0x8] sm:$0xff]  ;;  %v2855_v16 = vpack.c.bf16 %v75_v13, %v74_v12  ;;  %v3247_v17 = vld [vmem:[#allocation3 + $0xa0] sm:$0xff]  ;;  %v64_v43 = vld [vmem:[#allocation3 + $0x30] sm:$0xff]  ;;  %s3165_s25 = smov 80   ;;  %s3166_s26 = smov 96   ;;  %vm2361_vm2 = vcmask 261120  }
  0x3b   :  { %3054 = vlog2.f32 %v92_v4  ;;  %2812 = vmatpush3.bf16.xpose.msk.msra.mxu1 %vm3237_vm1, %v2807_v5  ;;  %v93_v15 = vmax.f32 %v91_v14, 0.0001  ;;  %v3249_v18 = vld [vmem:[#allocation3 + $0xa8] sm:$0xff]  ;;  %v103_v19 = vunpack.c.0.s8 %v102_v10  ;;  %v3269_v26 = vsub.s32 0, %v3251_v20  ;;  %v62_v31 = vld [vmem:[#allocation3 + $0x20] sm:$0xff]  ;;  %v65_v44 = vld [vmem:[#allocation3 + $0x38] sm:$0xff] }
  0x3c   :  { %2815 = vmatprep.subr.msk.bf16.mxu1 %vm3237_vm1, %v2813_v8  ;;  %v3255_v21 = vpack.c.bf16 %v3249_v18, %v3247_v17  ;;  %2857 = vmatprep.subr.msk.bf16.mxu0 %vm3237_vm1, %v2855_v16  ;;  %v63_v32 = vld [vmem:[#allocation3 + $0x28] sm:$0xff]  ;;  %v2825_v52 = vpack.c.bf16 %v65_v44, %v64_v43  ;;  %v82_v56 = vld [vmem:[#allocation3 + $0xc0] sm:$0xff]  ;;  %s3167_s27 = smov 112   ;;  %vm2364_vm3 = vcmask 392192   ;;  %vm2367_vm4 = vcmask 523264   ;;  %s3168_s28 = smov [#allocation9]  }
  0x3d   :  { %2860 = vmatpush3.bf16.xpose.msk.msra.mxu0 %vm3237_vm1, %v2855_v16  ;;  %3056 = vlog2.f32 %v93_v15  ;;  %v3265_v22 = vsub.s32 %v103_v19, %v3251_v20  ;;  %v2819_v38 = vpack.c.bf16 %v63_v32, %v62_v31  ;;  %v83_v57 = vld [vmem:[#allocation3 + $0xc8] sm:$0xff]  ;;  %v66_v3 = vld [vmem:[#allocation3 + $0x40] sm:$0xff]  ;;  %vm2370_vm5 = vcmask 654336   ;;  %s2554_s29 = sshll.u32 %s3168_s28, 4  ;;  %s2555_s29 = int_to_ptr.vmem [resolvable:$true] %s2554_s29 }
  0x3e   :  { %2869 = vmatprep.subr.msk.bf16.mxu0 %vm3237_vm1, %v3255_v21  ;;  %v67_v4 = vld [vmem:[#allocation3 + $0x48] sm:$0xff]  ;;  %v86_v14 = vld [vmem:[#allocation3 + $0xe0] sm:$0xff]  ;;  %vm2373_vm6 = vcmask 785408   ;;  %vm2376_vm7 = vcmask 916480   ;;  %s3124_s30 = scalar_lea.vmem %s2555_s29, 512  ;;  %p3129_p11 = scmp.lt.s32.totalorder %s2555_s29, %s2555_s29 }
  0x3f   :  { %v87_v15 = vld [vmem:[#allocation3 + $0xe8] sm:$0xff]  ;;  %p3125_p10 = scmp.ne.s32.totalorder %s2555_s29, %s3124_s30  ;;  %p3130_p12 = scmp.lt.s32.totalorder %s3124_s30, %s3124_s30 }
  0x40   :  { %v2415_v0 = vld [vmem:[#allocation8 + $0x58] sm:$0xff] }
  0x41   :  { %p3131_p13 = por %p3130_p12, %p3129_p11 }
  0x43   :  { %p3132_p0 = pnand %p3131_p13, %p3125_p10 }
  0x45   :  { %v3055_v23 = vpop.eup %3054 }
  0x46   :  { %v95_v24 = vmul.f32 0.6931472, %v3055_v23 }
  0x47   :  { %v3057_v33 = vpop.eup %3056 }
  0x48   :  { %v107_v25 = vrot.slane %v95_v24, %v3265_v22  ;;  %v97_v40 = vmul.f32 0.6931472, %v3057_v33  ;;  %v100_v46 = vcombine.high %v95_v24, %v95_v24  ;;  %v2891_v24 = vpack.c.bf16 %v87_v15, %v86_v14 }
  0x4a   :  { %v115_v27 = vcombine.high %v107_v25, %v107_v25  ;;  %v123_v28 = vrot.slane %v107_v25, %v3265_v22  ;;  %v149_v42 = vcombine.high %v97_v40, %v97_v40  ;;  %v3284_v45 = vrot.slane %v97_v40, %v3265_v22  ;;  %v68_v25 = vld [vmem:[#allocation3 + $0x50] sm:$0xff] }
  0x4b   :  { %v114_v59 = vrot.slane %v100_v46, %v3265_v22 }
  0x4c   :  { %v201_v29 = vrot.slane %v123_v28, %v3269_v26  ;;  %v137_v30 = vrot.slane %v115_v27, %v3265_v22  ;;  %v145_v34 = vcombine.high %v123_v28, %v123_v28  ;;  %v163_v49 = vrot.slane %v149_v42, %v3265_v22  ;;  %v69_v27 = vld [vmem:[#allocation3 + $0x58] sm:$0xff] }
  0x4d   :  { %v172_v51 = vrot.slane %v3284_v45, %v3265_v22  ;;  %v130_v10 = vrot.slane %v114_v59, %v3265_v22  ;;  %v116_v16 = vcombine.high %v114_v59, %v114_v59  ;;  %v81_v59 = vld [vmem:[#allocation3 + $0xb8] sm:$0xff] }
  0x4e   :  { %v279_v35 = vmul.f32 %v201_v29, %v59_v2  ;;  %v278_v36 = vmul.f32 %v201_v29, %v58_v1  ;;  %v205_v37 = vrot.slane %v137_v30, %v3269_v26  ;;  %v209_v41 = vrot.slane %v145_v34, %v3269_v26 }
  0x4f   :  { %v147_v48 = vcombine.high %v137_v30, %v137_v30  ;;  %v165_v53 = vcombine.high %v163_v49, %v163_v49  ;;  %v194_v54 = vcombine.high %v172_v51, %v172_v51  ;;  %v233_v55 = vrot.slane %v172_v51, %v3269_v26 }
  0x50   :  { %2699 = vmatprep.mubr.msk.f32.mxu1 %vm310_vm0, %v278_v36  ;;  %v280_v39 = vmul.f32 %v205_v37, %v60_v6  ;;  %v281_v47 = vmul.f32 %v205_v37, %v61_v7  ;;  %v282_v50 = vmul.f32 %v209_v41, %v62_v31  ;;  %v179_v63 = vrot.slane %v163_v49, %v3265_v22  ;;  %v71_v36 = vld [vmem:[#allocation3 + $0x68] sm:$0xff] }
  0x51   :  { %2700 = vmatmul.mubr.msk.f32.vlgmr.msra.gmra.mrb[0].mxu1 %vm310_vm0, %v279_v35  ;;  %v213_v58 = vrot.slane %v147_v48, %v3269_v26  ;;  %v193_v60 = vrot.slane %v165_v53, %v3265_v22  ;;  %v295_v61 = vmul.f32 %v233_v55, %v75_v13  ;;  %v294_v62 = vmul.f32 %v233_v55, %v74_v12  ;;  %v70_v35 = vld [vmem:[#allocation3 + $0x60] sm:$0xff]  ;;  %v77_v53 = vld [vmem:[#allocation3 + $0x98] sm:$0xff] }
  0x52   :  { %2818 = vmatpush3.bf16.xpose.msk.msra.mxu1 %vm3237_vm1, %v2813_v8  ;;  %2706 = vmatprep.mubr.msk.f32.mxu1 %vm310_vm0, %v280_v39  ;;  %v241_v1 = vrot.slane %v194_v54, %v3269_v26  ;;  %v2879_v2 = vpack.c.bf16 %v83_v57, %v82_v56  ;;  %v283_v6 = vmul.f32 %v209_v41, %v63_v32 }
  0x53   :  { %2821 = vmatprep.subr.msk.bf16.mxu1 %vm3237_vm1, %v2819_v38  ;;  %2755 = vmatprep.mubr.msk.f32.mxu0 %vm310_vm0, %v294_v62  ;;  %v3303_v5 = vrot.slane %v193_v60, %v3269_v26  ;;  %v197_v8 = vcombine.high %v193_v60, %v193_v60  ;;  %v284_v9 = vmul.f32 %v213_v58, %v64_v43  ;;  %v72_v43 = vld [vmem:[#allocation3 + $0x70] sm:$0xff] }
  0x54   :  { %2756 = vmatmul.mubr.msk.f32.vlgmr.msra.gmra.mrb[0].mxu0 %vm310_vm0, %v295_v61  ;;  %v298_v7 = vmul.f32 %v241_v1, %v3247_v17  ;;  %v249_v11 = vrot.slane %v179_v63, %v3269_v26  ;;  %v2831_v12 = vpack.c.bf16 %v67_v4, %v66_v3  ;;  %v299_v17 = vmul.f32 %v241_v1, %v3249_v18  ;;  %v84_v1 = vld [vmem:[#allocation3 + $0xd0] sm:$0xff] }
  0x55   :  { %2872 = vmatpush3.bf16.xpose.msk.msra.mxu0 %vm3237_vm1, %v3255_v21  ;;  %v3316_v13 = vrot.slane %v197_v8, %v3269_v26  ;;  %v217_v19 = vrot.slane %v130_v10, %v3269_v26  ;;  %v195_v23 = vcombine.high %v179_v63, %v179_v63  ;;  %v285_v28 = vmul.f32 %v213_v58, %v65_v44  ;;  %v73_v44 = vld [vmem:[#allocation3 + $0x78] sm:$0xff] }
  0x56   :  { %2769 = vmatprep.mubr.msk.f32.mxu0 %vm310_vm0, %v298_v7  ;;  %2881 = vmatprep.subr.msk.bf16.mxu0 %vm3237_vm1, %v2879_v2  ;;  %v302_v21 = vmul.f32 %v249_v11, %v82_v56  ;;  %v144_v18 = vrot.slane %v116_v16, %v3265_v22  ;;  %v2837_v31 = vpack.c.bf16 %v69_v27, %v68_v25  ;;  %v88_v7 = vld [vmem:[#allocation3 + $0xf0] sm:$0xff]  ;;  %v2407_v16 = vld [vmem:[#allocation8 + $0x18] sm:$0xff] }
  0x57   :  { %v286_v29 = vmul.f32 %v217_v19, %v66_v3  ;;  %v257_v30 = vrot.slane %v195_v23, %v3269_v26  ;;  %v303_v32 = vmul.f32 %v249_v11, %v83_v57  ;;  %v287_v37 = vmul.f32 %v217_v19, %v67_v4  ;;  %v2409_v23 = vld [vmem:[#allocation8 + $0x28] sm:$0xff] }
  0x58   :  { %v221_v33 = vrot.slane %v144_v18, %v3269_v26  ;;  %v146_v39 = vcombine.high %v130_v10, %v130_v10  ;;  %v2843_v40 = vpack.c.bf16 %v71_v36, %v70_v35  ;;  %v148_v48 = vcombine.high %v144_v18, %v144_v18 }
  0x59   :  { %2707 = vmatmul.mubr.msk.f32.vlgmr.msra.gmra.mrb[2].mxu1 %vm310_vm0, %v281_v47  ;;  %v306_v34 = vmul.f32 %v257_v30, %v86_v14  ;;  %v307_v41 = vmul.f32 %v257_v30, %v87_v15  ;;  %v2849_v49 = vpack.c.bf16 %v73_v44, %v72_v43  ;;  %v164_v51 = vcombine.high %v3284_v45, %v3284_v45  ;;  %v80_v45 = vld [vmem:[#allocation3 + $0xb0] sm:$0xff]  ;;  %v2405_v15 = vld [vmem:[#allocation8 + $0x8] sm:$0xff] }
  0x5a   :  { %2824 = vmatpush3.bf16.xpose.msk.msra.mxu1 %vm3237_vm1, %v2819_v38  ;;  %2713 = vmatprep.mubr.msk.f32.mxu1 %vm310_vm0, %v282_v50  ;;  %v288_v38 = vmul.f32 %v221_v33, %v68_v25  ;;  %v225_v42 = vrot.slane %v146_v39, %v3269_v26  ;;  %v289_v46 = vmul.f32 %v221_v33, %v69_v27  ;;  %v2408_v27 = vld [vmem:[#allocation8 + $0x20] sm:$0xff]  ;;  %v2419_v33 = vld [vmem:[#allocation8 + $0x78] sm:$0xff]  ;;  %v2421_v39 = vld [vmem:[#allocation8 + $0x88] sm:$0xff] }
  0x5b   :  { %2827 = vmatprep.subr.msk.bf16.mxu1 %vm3237_vm1, %v2825_v52  ;;  %v229_v50 = vrot.slane %v148_v48, %v3269_v26  ;;  %v186_v56 = vrot.slane %v164_v51, %v3265_v22  ;;  %v2873_v63 = vpack.c.bf16 %v81_v59, %v80_v45  ;;  %v2903_v19 = vpack.c.bf16 %v2407_v16, %v2405_v15  ;;  %v2412_v30 = vld [vmem:[#allocation8 + $0x40] sm:$0xff]  ;;  %v2427_v48 = vld [vmem:[#allocation8 + $0xb8] sm:$0xff] }
  0x5c   :  { %2770 = vmatmul.mubr.msk.f32.vlgmr.msra.gmra.mrb[2].mxu0 %vm310_vm0, %v299_v17  ;;  %v290_v47 = vmul.f32 %v225_v42, %v70_v35  ;;  %v291_v54 = vmul.f32 %v225_v42, %v71_v36  ;;  %v2404_v17 = vld [vmem:[#allocation8] sm:$0xff] }
  0x5d   :  { %2884 = vmatpush3.bf16.xpose.msk.msra.mxu0 %vm3237_vm1, %v2879_v2  ;;  %2783 = vmatprep.mubr.msk.f32.mxu0 %vm310_vm0, %v302_v21  ;;  %v292_v55 = vmul.f32 %v229_v50, %v72_v43  ;;  %v237_v58 = vrot.slane %v186_v56, %v3269_v26  ;;  %v293_v60 = vmul.f32 %v229_v50, %v73_v44  ;;  %v85_v2 = vld [vmem:[#allocation3 + $0xd8] sm:$0xff]  ;;  %v2406_v21 = vld [vmem:[#allocation8 + $0x10] sm:$0xff]  ;;  %v2416_v36 = vld [vmem:[#allocation8 + $0x60] sm:$0xff]  ;;  %v3160_v50 = vmov 1983009808  }
  0x5e   :  { %2893 = vmatprep.subr.msk.bf16.mxu0 %vm3237_vm1, %v2891_v24  ;;  %v196_v62 = vcombine.high %v186_v56, %v186_v56  ;;  %v305_v11 = vmul.f32 %v3303_v5, %v85_v2  ;;  %v2420_v44 = vld [vmem:[#allocation8 + $0x80] sm:$0xff]  ;;  %v1706_v51 = vunpack.c.l.s4 %v3160_v50  ;;  %v2429_v56 = vld [vmem:[#allocation8 + $0xc8] sm:$0xff] }
  0x5f   :  { %v297_v3 = vmul.f32 %v237_v58, %v77_v53 }
  0x60   :  { %v245_v22 = vrot.slane %v196_v62, %v3269_v26  ;;  %v89_v26 = vld [vmem:[#allocation3 + $0xf8] sm:$0xff]  ;;  %v2430_v62 = vld [vmem:[#allocation8 + $0xd0] sm:$0xff] }
  0x61   :  { %2714 = vmatmul.mubr.msk.f32.vlgmr.msra.gmra.mrb[4].mxu1 %vm310_vm0, %v283_v6  ;;  %v2885_v6 = vpack.c.bf16 %v85_v2, %v84_v1  ;;  %v2897_v10 = vpack.c.bf16 %v89_v26, %v88_v7  ;;  %v309_v14 = vmul.f32 %v3316_v13, %v89_v26  ;;  %v2434_v26 = vld [vmem:[#allocation8 + $0xf0] sm:$0xff] }
  0x62   :  { %2830 = vmatpush3.bf16.xpose.msk.msra.mxu1 %vm3237_vm1, %v2825_v52  ;;  %2720 = vmatprep.mubr.msk.f32.mxu1 %vm310_vm0, %v284_v9  ;;  %v76_v52 = vld [vmem:[#allocation3 + $0x90] sm:$0xff]  ;;  %v300_v4 = vmul.f32 %v245_v22, %v80_v45  ;;  %v301_v8 = vmul.f32 %v245_v22, %v81_v59  ;;  %v304_v9 = vmul.f32 %v3303_v5, %v84_v1  ;;  %v2411_v5 = vld [vmem:[#allocation8 + $0x38] sm:$0xff]  ;;  %v1707_v59 = vunpack.c.0.s8 %v1706_v51  ;;  %v2433_v22 = vld [vmem:[#allocation8 + $0xe8] sm:$0xff] }
  0x63   :  { %2833 = vmatprep.subr.msk.bf16.mxu1 %vm3237_vm1, %v2831_v12  ;;  %v2861_v57 = vpack.c.bf16 %v77_v53, %v76_v52  ;;  %v296_v61 = vmul.f32 %v237_v58, %v76_v52  ;;  %v2907_v25 = vpack.c.bf16 %v2411_v5, %v2409_v23  ;;  %v2424_v53 = vld [vmem:[#allocation8 + $0xa0] sm:$0xff]  ;;  %v2435_v1 = vld [vmem:[#allocation8 + $0xf8] sm:$0xff] }
  0x64   :  { %2784 = vmatmul.mubr.msk.f32.vlgmr.msra.gmra.mrb[4].mxu0 %vm310_vm0, %v303_v32  ;;  %v2417_v32 = vld [vmem:[#allocation8 + $0x68] sm:$0xff]  ;;  %v2444_v51 = vld [vmem:[#allocation8 + $0x140] sm:$0xff] }
  0x65   :  { %2896 = vmatpush3.bf16.xpose.msk.msra.mxu0 %vm3237_vm1, %v2891_v24  ;;  %2797 = vmatprep.mubr.msk.f32.mxu0 %vm310_vm0, %v306_v34  ;;  %v2905_v24 = vpack.c.bf16 %v2406_v21, %v2404_v17  ;;  %v2915_v35 = vpack.c.bf16 %v2419_v33, %v2417_v32 }
  0x66   :  { %2904 = vmatprep.subr.bf16.mxu0 %v2903_v19  ;;  %v3161_v19 = vmov 1934713408  }
  0x67   :  { %v1770_v21 = vunpack.c.l.s4 %v3161_v19 }
  0x69   :  { %2721 = vmatmul.mubr.msk.f32.vlgmr.msra.gmra.mrb[6].mxu1 %vm310_vm0, %v285_v28  ;;  %v2410_v28 = vld [vmem:[#allocation8 + $0x30] sm:$0xff] }
  0x6a   :  { %2836 = vmatpush3.bf16.xpose.msk.msra.mxu1 %vm3237_vm1, %v2831_v12  ;;  %2727 = vmatprep.mubr.msk.f32.mxu1 %vm310_vm0, %v286_v29  ;;  %v308_v12 = vmul.f32 %v3316_v13, %v88_v7  ;;  %v2413_v29 = vld [vmem:[#allocation8 + $0x48] sm:$0xff]  ;;  %v2909_v18 = vpack.c.bf16 %v2410_v28, %v2408_v27  ;;  %v2432_v7 = vld [vmem:[#allocation8 + $0xe0] sm:$0xff]  ;;  %v2438_v27 = vld [vmem:[#allocation8 + $0x110] sm:$0xff] }
  0x6b   :  { %2839 = vmatprep.subr.msk.bf16.mxu1 %vm3237_vm1, %v2837_v31  ;;  %v2911_v13 = vpack.c.bf16 %v2415_v0, %v2413_v29  ;;  %v2933_v17 = vpack.c.bf16 %v2434_v26, %v2432_v7 }
  0x6c   :  { %2798 = vmatmul.mubr.msk.f32.vlgmr.msra.gmra.mrb[6].mxu0 %vm310_vm0, %v307_v41 }
  0x6d   :  { %2906 = vmatpush1.bf16.msra.mxu0 %v2905_v24 }
  0x6e   :  { %2908 = vmatprep.subr.bf16.mxu0 %v2907_v25  ;;  %v2436_v25 = vld [vmem:[#allocation8 + $0x100] sm:$0xff] }
  0x71   :  { %2728 = vmatmul.mubr.msk.f32.vlgmr.msra.gmra.mrb[8].mxu1 %vm310_vm0, %v287_v37  ;;  %2910 = vmatpush1.bf16.msra.mxu0 %v2909_v18  ;;  %v2418_v37 = vld [vmem:[#allocation8 + $0x70] sm:$0xff]  ;;  %v2441_v18 = vld [vmem:[#allocation8 + $0x128] sm:$0xff] }
  0x72   :  { %2842 = vmatpush3.bf16.xpose.msk.msra.mxu1 %vm3237_vm1, %v2837_v31  ;;  %2734 = vmatprep.mubr.msk.f32.mxu1 %vm310_vm0, %v288_v38  ;;  %v2414_v31 = vld [vmem:[#allocation8 + $0x50] sm:$0xff]  ;;  %v2917_v42 = vpack.c.bf16 %v2418_v37, %v2416_v36  ;;  %v1771_v36 = vunpack.c.0.s8 %v1770_v21 }
  0x73   :  { %2845 = vmatprep.subr.msk.bf16.mxu1 %vm3237_vm1, %v2843_v40  ;;  %v2913_v34 = vpack.c.bf16 %v2414_v31, %v2412_v30  ;;  %2912 = vmatprep.subr.bf16.mxu0 %v2911_v13  ;;  %v2443_v13 = vld [vmem:[#allocation8 + $0x138] sm:$0xff] }
  0x75   :  { %2914 = vmatpush1.bf16.msra.mxu0 %v2913_v34 }
  0x76   :  { %2916 = vmatprep.subr.bf16.mxu0 %v2915_v35  ;;  %v2937_v35 = vpack.c.bf16 %v2438_v27, %v2436_v25 }
  0x79   :  { %2735 = vmatmul.mubr.msk.f32.vlgmr.msra.gmra.mrb[10].mxu1 %vm310_vm0, %v289_v46  ;;  %v2422_v46 = vld [vmem:[#allocation8 + $0x90] sm:$0xff]  ;;  %2918 = vmatpush1.bf16.msra.mxu0 %v2917_v42 }
  0x7a   :  { %2848 = vmatpush3.bf16.xpose.msk.msra.mxu1 %vm3237_vm1, %v2843_v40  ;;  %2741 = vmatprep.mubr.msk.f32.mxu1 %vm310_vm0, %v290_v47  ;;  %v2423_v40 = vld [vmem:[#allocation8 + $0x98] sm:$0xff]  ;;  %v2425_v47 = vld [vmem:[#allocation8 + $0xa8] sm:$0xff] }
  0x7b   :  { %2851 = vmatprep.subr.msk.bf16.mxu1 %vm3237_vm1, %v2849_v49  ;;  %v2919_v43 = vpack.c.bf16 %v2423_v40, %v2421_v39  ;;  %v2923_v52 = vpack.c.bf16 %v2427_v48, %v2425_v47  ;;  %v2939_v39 = vpack.c.bf16 %v2443_v13, %v2441_v18  ;;  %v2440_v40 = vld [vmem:[#allocation8 + $0x120] sm:$0xff]  ;;  %v2447_v47 = vld [vmem:[#allocation8 + $0x158] sm:$0xff] }
  0x7d   :  { %2920 = vmatprep.subr.bf16.mxu0 %v2919_v43 }
  0x81   :  { %2742 = vmatmul.mubr.msk.f32.vlgmr.msra.gmra.mrb[12].mxu1 %vm310_vm0, %v291_v54  ;;  %v2426_v54 = vld [vmem:[#allocation8 + $0xb0] sm:$0xff] }
  0x82   :  { %2854 = vmatpush3.bf16.xpose.msk.msra.mxu1 %vm3237_vm1, %v2849_v49  ;;  %2748 = vmatprep.mubr.msk.f32.mxu1 %vm310_vm0, %v292_v55  ;;  %v2921_v49 = vpack.c.bf16 %v2422_v46, %v2420_v44  ;;  %v2925_v45 = vpack.c.bf16 %v2426_v54, %v2424_v53  ;;  %v2445_v46 = vld [vmem:[#allocation8 + $0x148] sm:$0xff] }
  0x83   :  { %2863 = vmatprep.subr.msk.bf16.mxu1 %vm3237_vm1, %v2861_v57 }
  0x84   :  { %2922 = vmatpush1.bf16.msra.mxu0 %v2921_v49 }
  0x85   :  { %2924 = vmatprep.subr.bf16.mxu0 %v2923_v52  ;;  %v2446_v52 = vld [vmem:[#allocation8 + $0x150] sm:$0xff] }
  0x88   :  { %2926 = vmatpush1.bf16.msra.mxu0 %v2925_v45 }
  0x89   :  { %2749 = vmatmul.mubr.msk.f32.vlgmr.msra.gmra.mrb[14].mxu1 %vm310_vm0, %v293_v60 }
  0x8a   :  { %2866 = vmatpush3.bf16.xpose.msk.msra.mxu1 %vm3237_vm1, %v2861_v57  ;;  %2762 = vmatprep.mubr.msk.f32.mxu1 %vm310_vm0, %v296_v61  ;;  %v2431_v57 = vld [vmem:[#allocation8 + $0xd8] sm:$0xff]  ;;  %v2428_v61 = vld [vmem:[#allocation8 + $0xc0] sm:$0xff] }
  0x8b   :  { %2875 = vmatprep.subr.msk.bf16.mxu1 %vm3237_vm1, %v2873_v63  ;;  %v2927_v60 = vpack.c.bf16 %v2431_v57, %v2429_v56  ;;  %v3426_v57 = vsub.s32 %v1771_v36, %v3251_v20 }
  0x8d   :  { %2928 = vmatprep.subr.bf16.mxu0 %v2927_v60  ;;  %v2943_v60 = vpack.c.bf16 %v2447_v47, %v2445_v46 }
  0x91   :  { %2763 = vmatmul.mubr.msk.f32.vlgmr.msra.gmra.mrb[16].mxu1 %vm310_vm0, %v297_v3  ;;  %v2929_v3 = vpack.c.bf16 %v2430_v62, %v2428_v61 }
  0x92   :  { %2878 = vmatpush3.bf16.xpose.msk.msra.mxu1 %vm3237_vm1, %v2873_v63  ;;  %2776 = vmatprep.mubr.msk.f32.mxu1 %vm310_vm0, %v300_v4  ;;  %v3403_v4 = vsub.s32 %v1707_v59, %v3251_v20 }
  0x93   :  { %2887 = vmatprep.subr.msk.bf16.mxu1 %vm3237_vm1, %v2885_v6  ;;  %2930 = vmatpush1.bf16.msra.mxu0 %v2929_v3 }
  0x99   :  { %2777 = vmatmul.mubr.msk.f32.vlgmr.msra.gmra.mrb[18].mxu1 %vm310_vm0, %v301_v8 }
  0x9a   :  { %2890 = vmatpush3.bf16.xpose.msk.msra.mxu1 %vm3237_vm1, %v2885_v6  ;;  %2790 = vmatprep.mubr.msk.f32.mxu1 %vm310_vm0, %v304_v9  ;;  %v2931_v6 = vpack.c.bf16 %v2435_v1, %v2433_v22  ;;  %v2437_v9 = vld [vmem:[#allocation8 + $0x108] sm:$0xff] }
  0x9b   :  { %2899 = vmatprep.subr.msk.bf16.mxu1 %vm3237_vm1, %v2897_v10 }
  0x9c   :  { %2932 = vmatprep.subr.bf16.mxu0 %v2931_v6 }
  0x9d   :  { %2934 = vmatpush1.bf16.msra.mxu0 %v2933_v17 }
  0xa1   :  { %2791 = vmatmul.mubr.msk.f32.vlgmr.msra.gmra.mrb[20].mxu1 %vm310_vm0, %v305_v11 }
  0xa2   :  { %2902 = vmatpush3.bf16.xpose.msk.msra.mxu1 %vm3237_vm1, %v2897_v10  ;;  %2804 = vmatprep.mubr.msk.f32.mxu1 %vm310_vm0, %v308_v12  ;;  %v2439_v10 = vld [vmem:[#allocation8 + $0x118] sm:$0xff] }
  0xa3   :  { %v2935_v24 = vpack.c.bf16 %v2439_v10, %v2437_v9 }
  0xa5   :  { %2936 = vmatprep.subr.bf16.mxu0 %v2935_v24 }
  0xa6   :  { %2938 = vmatpush1.bf16.msra.mxu0 %v2937_v35 }
  0xa7   :  { %2940 = vmatprep.subr.bf16.mxu0 %v2939_v39 }
  0xa9   :  { %2805 = vmatmul.mubr.msk.f32.vlgmr.msra.gmra.mrb[22].mxu1 %vm310_vm0, %v309_v14 }
 0x124   :  { %v2701_v38 = vpop.f32.mrb[0].mxu1 }
 0x125   :  { %v389_v41 = vpop.f32.mrb[1].mxu1 }
 0x127   :  { %v2757_v63 = vpop.f32.mrb[0].mxu0 }
 0x128   :  { %v1085_v2 = vpop.f32.mrb[1].mxu0 }
 0x12c   :  { %v3398_v55 = vpop.f32.mrb[2].mxu1 }
 0x12d   :  { %v3400_v58 = vpop.f32.mrb[3].mxu1 }
 0x12f   :  { %v2771_v0 = vpop.f32.mrb[2].mxu0 }
 0x130   :  { %v2111_v30 = vcombine.low %v2757_v63, %v2771_v0  ;;  %v2112_v31 = vcombine.high %v2757_v63, %v2771_v0  ;;  %v1259_v32 = vpop.f32.mrb[3].mxu0  ;;  %v2945_v63 = vpack.c.bf16 %v2446_v52, %v2444_v51 }
 0x131   :  { %v1839_v33 = vcombine.low %v1085_v2, %v1259_v32  ;;  %v1840_v34 = vcombine.high %v1085_v2, %v1259_v32 }
 0x132   :  { %v3410_v37 = vrot.slane %v2111_v30, %v3403_v4 }
 0x133   :  { %v3416_v43 = vrot.slane %v1839_v33, %v3403_v4  ;;  %v3419_v44 = vrot.slane %v1840_v34, %v3403_v4 }
 0x134   :  { %v2715_v8 = vpop.f32.mrb[4].mxu1 }
 0x135   :  { %v1975_v11 = vcombine.low %v2701_v38, %v2715_v8  ;;  %v1976_v12 = vcombine.high %v2701_v38, %v2715_v8  ;;  %v563_v14 = vpop.f32.mrb[5].mxu1  ;;  %v3413_v38 = vrot.slane %v2112_v31, %v3403_v4 }
 0x136   :  { %v1703_v15 = vcombine.low %v389_v41, %v563_v14  ;;  %v1704_v16 = vcombine.high %v389_v41, %v563_v14  ;;  %v2442_v41 = vld [vmem:[#allocation8 + $0x130] sm:$0xff] }
 0x137   :  { %v1983_v23 = vrot.slane %v1975_v11, %v3403_v4  ;;  %v1990_v5 = vrot.slane %v1976_v12, %v3403_v4  ;;  %v2941_v56 = vpack.c.bf16 %v2442_v41, %v2440_v40  ;;  %v2785_v62 = vpop.f32.mrb[4].mxu0 }
 0x138   :  { %v1711_v28 = vrot.slane %v1703_v15, %v3403_v4  ;;  %v1718_v29 = vrot.slane %v1704_v16, %v3403_v4  ;;  %v1433_v3 = vpop.f32.mrb[5].mxu0 }
 0x139   :  { %2942 = vmatpush1.bf16.msra.mxu0 %v2941_v56  ;;  %v2451_v56 = vld [vmem:[#allocation8 + $0x178] sm:$0xff] }
 0x13a   :  { %2944 = vmatprep.subr.bf16.mxu0 %v2943_v60 }
 0x13c   :  { %v2722_v42 = vpop.f32.mrb[6].mxu1 }
 0x13d   :  { %v1991_v48 = vcombine.low %v3398_v55, %v2722_v42  ;;  %v1992_v49 = vcombine.high %v3398_v55, %v2722_v42  ;;  %v650_v50 = vpop.f32.mrb[7].mxu1  ;;  %2946 = vmatpush1.bf16.msra.mxu0 %v2945_v63 }
 0x13e   :  { %v1719_v53 = vcombine.low %v3400_v58, %v650_v50  ;;  %v1720_v54 = vcombine.high %v3400_v58, %v650_v50 }
 0x13f   :  { %v1999_v45 = vrot.slane %v1991_v48, %v3403_v4  ;;  %v2006_v59 = vrot.slane %v1992_v49, %v3403_v4  ;;  %v2799_v21 = vpop.f32.mrb[6].mxu0 }
 0x140   :  { %v1727_v55 = vrot.slane %v1719_v53, %v3403_v4  ;;  %v1734_v61 = vrot.slane %v1720_v54, %v3403_v4  ;;  %v1607_v24 = vpop.f32.mrb[7].mxu0  ;;  %v2449_v54 = vld [vmem:[#allocation8 + $0x168] sm:$0xff] }
 0x141   :  { %v2039_v22 = vcombine.low %v1983_v23, %v1999_v45  ;;  %v2040_v1 = vcombine.high %v1983_v23, %v1999_v45  ;;  %v2055_v58 = vcombine.low %v1990_v5, %v2006_v59  ;;  %v2056_v2 = vcombine.high %v1990_v5, %v2006_v59 }
 0x142   :  { %v1767_v6 = vcombine.low %v1711_v28, %v1727_v55  ;;  %v1768_v20 = vcombine.high %v1711_v28, %v1727_v55  ;;  %v1783_v7 = vcombine.low %v1718_v29, %v1734_v61  ;;  %v1784_v26 = vcombine.high %v1718_v29, %v1734_v61 }
 0x143   :  { %v3433_v8 = vrot.slane %v2055_v58, %v3426_v57  ;;  %v3436_v9 = vrot.slane %v2056_v2, %v3426_v57  ;;  %v3439_v10 = vrot.slane %v2040_v1, %v3426_v57  ;;  %v3442_v11 = vrot.slane %v2039_v22, %v3426_v57 }
 0x144   :  { %v3445_v12 = vrot.slane %v1783_v7, %v3426_v57  ;;  %v3448_v14 = vrot.slane %v1784_v26, %v3426_v57  ;;  %v2729_v15 = vpop.f32.mrb[8].mxu1  ;;  %v3451_v16 = vrot.slane %v1768_v20, %v3426_v57  ;;  %v3454_v17 = vrot.slane %v1767_v6, %v3426_v57 }
 0x145   :  { %v737_v19 = vpop.f32.mrb[9].mxu1  ;;  %v2143_v23 = vcombine.low %v2785_v62, %v2799_v21  ;;  %v2144_v5 = vcombine.high %v2785_v62, %v2799_v21  ;;  %v1871_v25 = vcombine.low %v1433_v3, %v1607_v24  ;;  %v1872_v27 = vcombine.high %v1433_v3, %v1607_v24 }
 0x146   :  { %v2947_v60 = vpack.c.bf16 %v2451_v56, %v2449_v54  ;;  %v2454_v54 = vld [vmem:[#allocation8 + $0x190] sm:$0xff]  ;;  %v2457_v56 = vld [vmem:[#allocation8 + $0x1a8] sm:$0xff] }
 0x147   :  { %v3457_v28 = vrot.slane %v2143_v23, %v3403_v4  ;;  %v3460_v29 = vrot.slane %v2144_v5, %v3403_v4  ;;  %v3463_v18 = vrot.slane %v1871_v25, %v3403_v4  ;;  %v3466_v13 = vrot.slane %v1872_v27, %v3403_v4 }
 0x148   :  { %2948 = vmatprep.subr.bf16.mxu0 %v2947_v60 }
 0x14c   :  { %v2736_v0 = vpop.f32.mrb[10].mxu1 }
 0x14d   :  { %v824_v30 = vpop.f32.mrb[11].mxu1 }
 0x154   :  { %v2743_v31 = vpop.f32.mrb[12].mxu1 }
 0x155   :  { %v2007_v32 = vcombine.low %v2729_v15, %v2743_v31  ;;  %v2008_v33 = vcombine.high %v2729_v15, %v2743_v31  ;;  %v911_v34 = vpop.f32.mrb[13].mxu1 }
 0x156   :  { %v1735_v35 = vcombine.low %v737_v19, %v911_v34  ;;  %v1736_v36 = vcombine.high %v737_v19, %v911_v34 }
 0x157   :  { %v2015_v39 = vrot.slane %v2007_v32, %v3403_v4  ;;  %v2022_v40 = vrot.slane %v2008_v33, %v3403_v4 }
 0x158   :  { %v1743_v41 = vrot.slane %v1735_v35, %v3403_v4  ;;  %v1750_v42 = vrot.slane %v1736_v36, %v3403_v4 }
 0x15c   :  { %v2750_v46 = vpop.f32.mrb[14].mxu1 }
 0x15d   :  { %v2023_v47 = vcombine.low %v2736_v0, %v2750_v46  ;;  %v2024_v48 = vcombine.high %v2736_v0, %v2750_v46  ;;  %v998_v49 = vpop.f32.mrb[15].mxu1 }
 0x15e   :  { %v1751_v50 = vcombine.low %v824_v30, %v998_v49  ;;  %v1752_v51 = vcombine.high %v824_v30, %v998_v49  ;;  %v2453_v49 = vld [vmem:[#allocation8 + $0x188] sm:$0xff] }
 0x15f   :  { %v2031_v52 = vrot.slane %v2023_v47, %v3403_v4  ;;  %v2038_v53 = vrot.slane %v2024_v48, %v3403_v4 }
 0x160   :  { %v1759_v45 = vrot.slane %v1751_v50, %v3403_v4  ;;  %v1766_v59 = vrot.slane %v1752_v51, %v3403_v4  ;;  %v2455_v50 = vld [vmem:[#allocation8 + $0x198] sm:$0xff] }
 0x161   :  { %v2071_v55 = vcombine.low %v2015_v39, %v2031_v52  ;;  %v2072_v61 = vcombine.high %v2015_v39, %v2031_v52  ;;  %v2087_v62 = vcombine.low %v2022_v40, %v2038_v53  ;;  %v2088_v63 = vcombine.high %v2022_v40, %v2038_v53  ;;  %v2448_v40 = vld [vmem:[#allocation8 + $0x160] sm:$0xff] }
 0x162   :  { %v1799_v22 = vcombine.low %v1743_v41, %v1759_v45  ;;  %v1800_v1 = vcombine.high %v1743_v41, %v1759_v45  ;;  %v1815_v58 = vcombine.low %v1750_v42, %v1766_v59  ;;  %v1816_v2 = vcombine.high %v1750_v42, %v1766_v59  ;;  %v2450_v41 = vld [vmem:[#allocation8 + $0x170] sm:$0xff]  ;;  %v2459_v45 = vld [vmem:[#allocation8 + $0x1b8] sm:$0xff] }
 0x163   :  { %v2095_v3 = vrot.slane %v2087_v62, %v3426_v57  ;;  %v2102_v6 = vrot.slane %v2088_v63, %v3426_v57  ;;  %v2086_v20 = vrot.slane %v2072_v61, %v3426_v57  ;;  %v3480_v7 = vrot.slane %v2071_v55, %v3426_v57  ;;  %v2456_v63 = vld [vmem:[#allocation8 + $0x1a0] sm:$0xff] }
 0x164   :  { %v1823_v26 = vrot.slane %v1815_v58, %v3426_v57  ;;  %v1830_v15 = vrot.slane %v1816_v2, %v3426_v57  ;;  %v2764_v19 = vpop.f32.mrb[16].mxu1  ;;  %v1814_v21 = vrot.slane %v1800_v1, %v3426_v57  ;;  %v3486_v23 = vrot.slane %v1799_v22, %v3426_v57  ;;  %v2461_v22 = vld [vmem:[#allocation8 + $0x1c8] sm:$0xff] }
 0x165   :  { %v1172_v5 = vpop.f32.mrb[17].mxu1  ;;  %v2106_v24 = vcombine.high %v3439_v10, %v2086_v20  ;;  %v2103_v25 = vcombine.low %v3442_v11, %v3480_v7  ;;  %v2104_v27 = vcombine.high %v3442_v11, %v3480_v7  ;;  %v2107_v0 = vcombine.low %v3433_v8, %v2095_v3 }
 0x166   :  { %v1834_v30 = vcombine.high %v3451_v16, %v1814_v21  ;;  %v1832_v31 = vcombine.high %v3454_v17, %v3486_v23  ;;  %v1831_v32 = vcombine.low %v3454_v17, %v3486_v23  ;;  %v1835_v33 = vcombine.low %v3445_v12, %v1823_v26 }
 0x167   :  { %v1833_v34 = vcombine.low %v3451_v16, %v1814_v21  ;;  %v2105_v35 = vcombine.low %v3439_v10, %v2086_v20  ;;  %v1836_v36 = vcombine.high %v3445_v12, %v1823_v26  ;;  %v2108_v39 = vcombine.high %v3433_v8, %v2095_v3  ;;  %v2452_v10 = vld [vmem:[#allocation8 + $0x180] sm:$0xff]  ;;  %v2463_v20 = vld [vmem:[#allocation8 + $0x1d8] sm:$0xff] }
 0x168   :  { %v2994_v42 = vpack.i.bf16 %v1834_v30, %v2106_v24  ;;  %v2984_v46 = vpack.i.bf16 %v1832_v31, %v2104_v27  ;;  %v2999_v47 = vpack.i.bf16 %v1835_v33, %v2107_v0  ;;  %v1837_v48 = vcombine.low %v3448_v14, %v1830_v15  ;;  %v2460_v26 = vld [vmem:[#allocation8 + $0x1c0] sm:$0xff] }
 0x169   :  { %v2989_v51 = vpack.i.bf16 %v1833_v34, %v2105_v35  ;;  %v3004_v52 = vpack.i.bf16 %v1836_v36, %v2108_v39  ;;  %v2109_v53 = vcombine.low %v3436_v9, %v2102_v6  ;;  %v1838_v16 = vcombine.high %v3448_v14, %v1830_v15  ;;  %v2458_v14 = vld [vmem:[#allocation8 + $0x1b0] sm:$0xff] }
 0x16a   :  { %2995 = vrot.lane.b32.xlu1 %v2994_v42, %s3162_s2  ;;  %2985 = vrot.lane.b32.xlu0 %v2984_v46, %s3158_s15  ;;  %v2110_v8 = vcombine.high %v3436_v9, %v2102_v6  ;;  %v2949_v12 = vpack.c.bf16 %v2450_v41, %v2448_v40  ;;  %v2951_v60 = vpack.c.bf16 %v2455_v50, %v2453_v49  ;;  %v2462_v9 = vld [vmem:[#allocation8 + $0x1d0] sm:$0xff]  ;;  %v2465_v42 = vld [vmem:[#allocation8 + $0x1e8] sm:$0xff]  ;;  %v2467_v46 = vld [vmem:[#allocation8 + $0x1f8] sm:$0xff] }
 0x16b   :  { %v3009_v59 = vpack.i.bf16 %v1837_v48, %v2109_v53  ;;  %v2953_v62 = vpack.c.bf16 %v2454_v54, %v2452_v10  ;;  %v2955_v3 = vpack.c.bf16 %v2459_v45, %v2457_v56  ;;  %v2957_v27 = vpack.c.bf16 %v2458_v14, %v2456_v63  ;;  %v2466_v10 = vld [vmem:[#allocation8 + $0x1f0] sm:$0xff] }
 0x16c   :  { %v2778_v55 = vpop.f32.mrb[18].mxu1  ;;  %v3014_v61 = vpack.i.bf16 %v1838_v16, %v2110_v8  ;;  %2950 = vmatpush1.bf16.msra.mxu0 %v2949_v12  ;;  %v2959_v30 = vpack.c.bf16 %v2463_v20, %v2461_v22  ;;  %v2961_v31 = vpack.c.bf16 %v2462_v9, %v2460_v26  ;;  %v2963_v53 = vpack.c.bf16 %v2467_v46, %v2465_v42  ;;  %v2464_v16 = vld [vmem:[#allocation8 + $0x1e0] sm:$0xff] }
 0x16d   :  { %v2127_v1 = vcombine.low %v2764_v19, %v2778_v55  ;;  %v2128_v58 = vcombine.high %v2764_v19, %v2778_v55  ;;  %v1346_v2 = vpop.f32.mrb[19].mxu1  ;;  %2952 = vmatprep.subr.bf16.mxu0 %v2951_v60  ;;  %v2965_v54 = vpack.c.bf16 %v2466_v10, %v2464_v16 }
 0x16e   :  { %v1855_v6 = vcombine.low %v1172_v5, %v1346_v2  ;;  %v1856_v15 = vcombine.high %v1172_v5, %v1346_v2  ;;  %3000 = vrot.lane.b32.xlu1 %v2999_v47, %s3163_s23  ;;  %2990 = vrot.lane.b32.xlu0 %v2989_v51, %s3164_s24 }
 0x16f   :  { %v2135_v21 = vrot.slane %v2127_v1, %v3403_v4  ;;  %v2142_v24 = vrot.slane %v2128_v58, %v3403_v4 }
 0x170   :  { %v1863_v19 = vrot.slane %v1855_v6, %v3403_v4  ;;  %v1870_v0 = vrot.slane %v1856_v15, %v3403_v4  ;;  %2954 = vmatpush1.bf16.msra.mxu0 %v2953_v62 }
 0x171   :  { %v2175_v5 = vcombine.low %v3410_v37, %v2135_v21  ;;  %v2176_v33 = vcombine.high %v3410_v37, %v2135_v21  ;;  %v2191_v34 = vcombine.low %v3413_v38, %v2142_v24  ;;  %v2192_v35 = vcombine.high %v3413_v38, %v2142_v24  ;;  %2956 = vmatprep.subr.bf16.mxu0 %v2955_v3 }
 0x172   :  { %v1903_v36 = vcombine.low %v3416_v43, %v1863_v19  ;;  %v1904_v39 = vcombine.high %v3416_v43, %v1863_v19  ;;  %v1919_v40 = vcombine.low %v3419_v44, %v1870_v0  ;;  %v1920_v41 = vcombine.high %v3419_v44, %v1870_v0  ;;  %3005 = vrot.lane.b32.xlu1 %v3004_v52, %s3165_s25 }
 0x173   :  { %v3526_v37 = vrot.slane %v2176_v33, %v3426_v57  ;;  %v3529_v47 = vrot.slane %v2191_v34, %v3426_v57  ;;  %v3532_v38 = vrot.slane %v2192_v35, %v3426_v57  ;;  %v3535_v43 = vrot.slane %v2175_v5, %v3426_v57 }
 0x174   :  { %v3538_v48 = vrot.slane %v1904_v39, %v3426_v57  ;;  %v3541_v44 = vrot.slane %v1919_v40, %v3426_v57  ;;  %v3544_v49 = vrot.slane %v1920_v41, %v3426_v57  ;;  %v2792_v50 = vpop.f32.mrb[20].mxu1  ;;  %v3547_v51 = vrot.slane %v1903_v36, %v3426_v57  ;;  %2958 = vmatpush1.bf16.msra.mxu0 %v2957_v27 }
 0x175   :  { %v1520_v52 = vpop.f32.mrb[21].mxu1  ;;  %2960 = vmatprep.subr.bf16.mxu0 %v2959_v30 }
 0x176   :  { %3010 = vrot.lane.b32.xlu1 %v3009_v59, %s3166_s26 }
 0x178   :  { %2962 = vmatpush1.bf16.msra.mxu0 %v2961_v31 }
 0x179   :  { %2964 = vmatprep.subr.bf16.mxu0 %v2963_v53 }
 0x17a   :  { %3015 = vrot.lane.b32.xlu1 %v3014_v61, %s3167_s27 }
 0x17c   :  { %v2806_v8 = vpop.f32.mrb[22].mxu1  ;;  %2966 = vmatpush1.bf16.msra.mxu0 %v2965_v54 }
 0x17d   :  { %v2159_v12 = vcombine.low %v2792_v50, %v2806_v8  ;;  %v2160_v56 = vcombine.high %v2792_v50, %v2806_v8  ;;  %v1694_v45 = vpop.f32.mrb[23].mxu1 }
 0x17e   :  { %v1887_v60 = vcombine.low %v1520_v52, %v1694_v45  ;;  %v1888_v55 = vcombine.high %v1520_v52, %v1694_v45 }
 0x17f   :  { %v2167_v62 = vrot.slane %v2159_v12, %v3403_v4  ;;  %v2174_v63 = vrot.slane %v2160_v56, %v3403_v4 }
 0x180   :  { %v1895_v14 = vrot.slane %v1887_v60, %v3403_v4  ;;  %v1902_v59 = vrot.slane %v1888_v55, %v3403_v4 }
 0x181   :  { %v2207_v22 = vcombine.low %v3457_v28, %v2167_v62  ;;  %v2208_v1 = vcombine.high %v3457_v28, %v2167_v62  ;;  %v2223_v61 = vcombine.low %v3460_v29, %v2174_v63  ;;  %v2224_v58 = vcombine.high %v3460_v29, %v2174_v63 }
 0x182   :  { %v1935_v2 = vcombine.low %v3463_v18, %v1895_v14  ;;  %v1936_v3 = vcombine.high %v3463_v18, %v1895_v14  ;;  %v1951_v20 = vcombine.low %v3466_v13, %v1902_v59  ;;  %v1952_v26 = vcombine.high %v3466_v13, %v1902_v59 }
 0x183   :  { %v2222_v9 = vrot.slane %v2208_v1, %v3426_v57  ;;  %v2231_v4 = vrot.slane %v2223_v61, %v3426_v57  ;;  %v2238_v6 = vrot.slane %v2224_v58, %v3426_v57  ;;  %v3567_v28 = vrot.slane %v2207_v22, %v3426_v57 }
 0x184   :  { %v1950_v15 = vrot.slane %v1936_v3, %v3426_v57  ;;  %v1959_v29 = vrot.slane %v1951_v20, %v3426_v57  ;;  %v1966_v21 = vrot.slane %v1952_v26, %v3426_v57  ;;  %v3573_v18 = vrot.slane %v1935_v2, %v3426_v57 }
 0x185   :  { %v2244_v13 = vcombine.high %v3529_v47, %v2231_v4  ;;  %v2239_v24 = vcombine.low %v3535_v43, %v3567_v28  ;;  %v2240_v27 = vcombine.high %v3535_v43, %v3567_v28  ;;  %v2246_v19 = vcombine.high %v3532_v38, %v2238_v6 }
 0x186   :  { %v1972_v0 = vcombine.high %v3541_v44, %v1959_v29  ;;  %v1968_v30 = vcombine.high %v3547_v51, %v3573_v18  ;;  %v1967_v31 = vcombine.low %v3547_v51, %v3573_v18  ;;  %v1974_v57 = vcombine.high %v3544_v49, %v1966_v21 }
 0x187   :  { %v1969_v5 = vcombine.low %v3538_v48, %v1950_v15  ;;  %v2241_v33 = vcombine.low %v3526_v37, %v2222_v9  ;;  %v1970_v34 = vcombine.high %v3538_v48, %v1950_v15  ;;  %v2242_v35 = vcombine.high %v3526_v37, %v2222_v9 }
 0x188   :  { %v3039_v36 = vpack.i.bf16 %v1972_v0, %v2244_v13  ;;  %v3019_v39 = vpack.i.bf16 %v1968_v30, %v2240_v27  ;;  %v3049_v40 = vpack.i.bf16 %v1974_v57, %v2246_v19  ;;  %v1971_v41 = vcombine.low %v3541_v44, %v1959_v29 }
 0x189   :  { %v3024_v42 = vpack.i.bf16 %v1969_v5, %v2241_v33  ;;  %v3029_v46 = vpack.i.bf16 %v1970_v34, %v2242_v35  ;;  %v2243_v50 = vcombine.low %v3529_v47, %v2231_v4  ;;  %v1973_v52 = vcombine.low %v3544_v49, %v1966_v21 }
 0x18a   :  { %3040 = vrot.lane.b32.xlu1 %v3039_v36, %s3165_s25  ;;  %3020 = vrot.lane.b32.xlu0 %v3019_v39, %s3158_s15  ;;  %v2245_v53 = vcombine.low %v3532_v38, %v2238_v6 }
 0x18b   :  { %v3034_v48 = vpack.i.bf16 %v1971_v41, %v2243_v50 }
 0x18c   :  { %v3044_v16 = vpack.i.bf16 %v1973_v52, %v2245_v53 }
 0x18e   :  { %3050 = vrot.lane.b32.xlu1 %v3049_v40, %s3167_s27  ;;  %3025 = vrot.lane.b32.xlu0 %v3024_v42, %s3164_s24 }
 0x192   :  { %3030 = vrot.lane.b32.xlu0 %v3029_v46, %s3162_s2 }
 0x196   :  { %3035 = vrot.lane.b32.xlu0 %v3034_v48, %s3163_s23 }
 0x19a   :  { %3045 = vrot.lane.b32.xlu0 %v3044_v16, %s3166_s26 }
 0x1dc   :  { %v2996_v37 = vpop.permute.xlu1 %2995  ;;  %v2986_v47 = vpop.permute.xlu0 %2985 }
 0x1dd   :  { %v2988_v44 = vunpack.i.h.bf16 %v2986_v47  ;;  %v2987_v49 = vunpack.i.l.bf16 %v2986_v47  ;;  %v2998_v62 = vunpack.i.h.bf16 %v2996_v37  ;;  %v2997_v63 = vunpack.i.l.bf16 %v2996_v37 }
 0x1df   :  { %v2359_v12 = vsel %vm310_vm0, %v1831_v32, %v2988_v44  ;;  %v2379_v56 = vsel %vm310_vm0, %v2103_v25, %v2987_v49 }
 0x1e0   :  { %v3001_v10 = vpop.permute.xlu1 %3000  ;;  %v2991_v54 = vpop.permute.xlu0 %2990 }
 0x1e1   :  { %v2993_v38 = vunpack.i.h.bf16 %v2991_v54  ;;  %v2992_v8 = vunpack.i.l.bf16 %v2991_v54  ;;  %v3003_v17 = vunpack.i.h.bf16 %v3001_v10  ;;  %v3002_v23 = vunpack.i.l.bf16 %v3001_v10 }
 0x1e3   :  { %v2362_v45 = vsel %vm2361_vm2, %v2359_v12, %v2993_v38  ;;  %v2381_v60 = vsel %vm2361_vm2, %v2379_v56, %v2992_v8 }
 0x1e4   :  { %v3006_v55 = vpop.permute.xlu1 %3005  ;;  %v2365_v14 = vsel %vm2364_vm3, %v2362_v45, %v2998_v62  ;;  %v2383_v59 = vsel %vm2364_vm3, %v2381_v60, %v2997_v63 }
 0x1e5   :  { %v3008_v11 = vunpack.i.h.bf16 %v3006_v55  ;;  %v3007_v7 = vunpack.i.l.bf16 %v3006_v55  ;;  %v2368_v25 = vsel %vm2367_vm4, %v2365_v14, %v3003_v17  ;;  %v2385_v61 = vsel %vm2367_vm4, %v2383_v59, %v3002_v23 }
 0x1e7   :  { %v2371_v2 = vsel %vm2370_vm5, %v2368_v25, %v3008_v11  ;;  %v2387_v26 = vsel %vm2370_vm5, %v2385_v61, %v3007_v7 }
 0x1e8   :  { %v3011_v32 = vpop.permute.xlu1 %3010 }
 0x1e9   :  { %v3013_v22 = vunpack.i.h.bf16 %v3011_v32  ;;  %v3012_v1 = vunpack.i.l.bf16 %v3011_v32 }
 0x1eb   :  { %v2389_v9 = vsel %vm2373_vm6, %v2387_v26, %v3012_v1  ;;  %v2374_v4 = vsel %vm2373_vm6, %v2371_v2, %v3013_v22 }
 0x1ec   :  { %v3016_v58 = vpop.permute.xlu1 %3015 }
 0x1ed   :  { %v3018_v3 = vunpack.i.h.bf16 %v3016_v58  ;;  %v3017_v20 = vunpack.i.l.bf16 %v3016_v58 }
 0x1ef   :  { %v2391_v6 = vsel %vm2376_vm7, %v2389_v9, %v3017_v20  ;;  %v2377_v15 = vsel %vm2376_vm7, %v2374_v4, %v3018_v3 }
 0x1f0   :  { %2532 = vmatprep.mubr.f32.mxu0 %v2391_v6 }
 0x1f1   :  { %2533 = vmatmul.mubr.f32.vlgmr.msra.gmra.mrb[8].mxu0 %v2377_v15 }
 0x1fc   :  { %v3021_v29 = vpop.permute.xlu0 %3020  ;;  %v3041_v0 = vpop.permute.xlu1 %3040 }
 0x1fd   :  { %v3023_v13 = vunpack.i.h.bf16 %v3021_v29  ;;  %v3022_v27 = vunpack.i.l.bf16 %v3021_v29  ;;  %v3042_v43 = vunpack.i.l.bf16 %v3041_v0 }
 0x1ff   :  { %v2360_v34 = vsel %vm310_vm0, %v1967_v31, %v3023_v13  ;;  %v2380_v35 = vsel %vm310_vm0, %v2239_v24, %v3022_v27  ;;  %v3043_v31 = vunpack.i.h.bf16 %v3041_v0 }
 0x200   :  { %v3026_v21 = vpop.permute.xlu0 %3025  ;;  %v3051_v52 = vpop.permute.xlu1 %3050 }
 0x201   :  { %v3028_v30 = vunpack.i.h.bf16 %v3026_v21  ;;  %v3027_v57 = vunpack.i.l.bf16 %v3026_v21  ;;  %v3053_v48 = vunpack.i.h.bf16 %v3051_v52  ;;  %v3052_v16 = vunpack.i.l.bf16 %v3051_v52 }
 0x203   :  { %v2363_v39 = vsel %vm2361_vm2, %v2360_v34, %v3028_v30  ;;  %v2382_v40 = vsel %vm2361_vm2, %v2380_v35, %v3027_v57 }
 0x204   :  { %v3031_v19 = vpop.permute.xlu0 %3030 }
 0x205   :  { %v3033_v5 = vunpack.i.h.bf16 %v3031_v19  ;;  %v3032_v33 = vunpack.i.l.bf16 %v3031_v19 }
 0x207   :  { %v2366_v46 = vsel %vm2364_vm3, %v2363_v39, %v3033_v5  ;;  %v2384_v50 = vsel %vm2364_vm3, %v2382_v40, %v3032_v33 }
 0x208   :  { %v3036_v36 = vpop.permute.xlu0 %3035 }
 0x209   :  { %v3038_v41 = vunpack.i.h.bf16 %v3036_v36  ;;  %v3037_v42 = vunpack.i.l.bf16 %v3036_v36 }
 0x20b   :  { %v2369_v51 = vsel %vm2367_vm4, %v2366_v46, %v3038_v41  ;;  %v2386_v18 = vsel %vm2367_vm4, %v2384_v50, %v3037_v42 }
 0x20c   :  { %v3046_v28 = vpop.permute.xlu0 %3045  ;;  %v2388_v37 = vsel %vm2370_vm5, %v2386_v18, %v3042_v43  ;;  %v2372_v47 = vsel %vm2370_vm5, %v2369_v51, %v3043_v31 }
 0x20d   :  { %v3048_v24 = vunpack.i.h.bf16 %v3046_v28  ;;  %v3047_v53 = vunpack.i.l.bf16 %v3046_v28 }
 0x20f   :  { %v2390_v44 = vsel %vm2373_vm6, %v2388_v37, %v3047_v53  ;;  %v2375_v49 = vsel %vm2373_vm6, %v2372_v47, %v3048_v24 }
 0x210   :  { %v2392_v10 = vsel %vm2376_vm7, %v2390_v44, %v3052_v16  ;;  %v2378_v54 = vsel %vm2376_vm7, %v2375_v49, %v3053_v48 }
 0x211   :  { %2538 = vmatprep.mubr.f32.mxu0 %v2392_v10 }
 0x212   :  { %2539 = vmatmul.mubr.f32.gmra.mrb[10].mxu0 %v2378_v54 }
 0x2c4   :  { %v2534_v38 = vpop.f32.mrb[8].mxu0 }
 0x2c5   :  { %2545 = vst [vmem:[#allocation9] sm:$0xff] %v2534_v38  ;;  %v2536_v8 = vpop.f32.mrb[9].mxu0 }
 0x2c6   :  { %2546 = vst [vmem:[#allocation9 + $0x8] sm:$0xff] %v2536_v8 }
 0x2e5   :  { %v2540_v12 = vpop.f32.mrb[10].mxu0 }
 0x2e6   :  { %2547 = vst [vmem:[#allocation9 + $0x10] sm:$0xff] %v2540_v12  ;;  %v2542_v56 = vpop.f32.mrb[11].mxu0 }
 0x2e7   :  { %2548 = vst [vmem:[#allocation9 + $0x18] sm:$0xff] %v2542_v56 }
 0x2e8   :  { %3135 = shalt.err (!%p3132_p0)
}
 0x2e9   :  { %s3136_s6 = scalar_lea.hbm %s3660_s3, 512 }
 0x2ea   :  { %p3137_p1 = scmp.ne.s32.totalorder %s3660_s3, %s3136_s6  ;;  %p3140_p2 = scmp.lt.u32.totalorder %s3136_s6, %s3660_s3 }
 0x2ec   :  { %p3142_p3 = pnand %p3140_p2, %p3137_p1 }
 0x2ee   :  { %3145 = shalt.err (!%p3142_p3)
}
 0x2ef   :  { %2560 = dma.vmem_to_hbm [thread:$0]  %s2555_s29, 512, %s3660_s3, [#allocation5], %s3157_s0, %s3157_s0, %s3158_s15  }
 0x2f0   :  { %3150 = dma.done.wait [#allocation5], 512  }
 0x2f1   :  { %3151 = vsyncadd [#allocation5], 4294966784 }
 0x2f2   :  { %2564 = vsyncpa [#allocation4], 1 }
 0x2f3   :  { %2565 = vsyncpa [#allocation7], 1 }
 0x2f4   :  { %2566 = vsyncpa [#allocation5], 1 }

</bundles_post_ra>
